<compile_context>
chip_gen: v7x
topology: tpu7x:2x2x1
jax: 0.10.0
libtpu: 0.0.40
codegen_flags: <defaults>
</compile_context>

<pallas_src>
import functools

import jax
import jax.numpy as jnp
from jax import lax
from jax.experimental import pallas as pl
from jax.experimental.pallas import tpu as pltpu


def _mse_kernel(y_ref, p_ref, o_ref, acc_ref, *,
                rows, cols, block_r, block_c, mask_rows, mask_cols):
    i = pl.program_id(0)   # row-block axis ("parallel")
    j = pl.program_id(1)   # col-block / reduction axis ("arbitrary")

    @pl.when(j == 0)
    def _():
        acc_ref[...] = jnp.zeros_like(acc_ref)

    d = y_ref[...].astype(jnp.float32) - p_ref[...].astype(jnp.float32)
    sq = d * d

    # Mask the ragged tail; these branches resolve at trace time and disappear
    # entirely when block shapes divide the array evenly.
    ok = None
    if mask_rows:
        r_idx = i * block_r + lax.broadcasted_iota(
            jnp.int32, (block_r, block_c), 0)
        ok = r_idx < rows
    if mask_cols:
        c_idx = j * block_c + lax.broadcasted_iota(
            jnp.int32, (block_r, block_c), 1)
        cmask = c_idx < cols
        ok = cmask if ok is None else (ok & cmask)
    if ok is not None:
        sq = jnp.where(ok, sq, 0.0)

    # Pure elementwise (VPU) accumulation every step; no per-step reductions.
    acc_ref[...] += sq

    @pl.when(j == pl.num_programs(1) - 1)
    def _():
        # Collapse sublanes once per row-block; lane-dense (1, block_c) store.
        o_ref[...] = jnp.sum(acc_ref[...], axis=0, keepdims=True)


def _round_up(x, m):
    return ((x + m - 1) // m) * m


def mse(y, y_pred, *, target_block_elems=512 * 1024):
    assert y.shape == y_pred.shape, "y and y_pred must have the same shape"
    n = int(y.shape[0])  # PyTorch module divides by the leading-dim size only.

    # Free reshape; no padding, no dtype copy in HBM.
    y2 = jnp.asarray(y).reshape(n, -1)
    p2 = jnp.asarray(y_pred).reshape(n, -1)
    R, C = y2.shape

    # ~2 MiB (f32) per input block: lane dim multiple of 128 (capped at 2048),
    # sublane dim multiple of 8.
    block_c = min(_round_up(C, 128), 2048)
    max_block_r = max(8, (target_block_elems // block_c) // 8 * 8)
    block_r = min(_round_up(R, 8), max_block_r)

    nr = pl.cdiv(R, block_r)
    nc = pl.cdiv(C, block_c)

    kernel = functools.partial(
        _mse_kernel,
        rows=R, cols=C, block_r=block_r, block_c=block_c,
        mask_rows=(R % block_r != 0), mask_cols=(C % block_c != 0))

    partials = pl.pallas_call(
        kernel,
        out_shape=jax.ShapeDtypeStruct((nr, block_c), jnp.float32),
        grid_spec=pltpu.PrefetchScalarGridSpec(
            num_scalar_prefetch=0,
            grid=(nr, nc),
            in_specs=[
                pl.BlockSpec((block_r, block_c), lambda i, j: (i, j)),
                pl.BlockSpec((block_r, block_c), lambda i, j: (i, j)),
            ],
            out_specs=pl.BlockSpec((1, block_c), lambda i, j: (i, 0)),
            scratch_shapes=[pltpu.VMEM((block_r, block_c), jnp.float32)],
        ),
        compiler_params=pltpu.CompilerParams(
            dimension_semantics=("parallel", "arbitrary"),
        ),
    )(y2, p2)

    # Sum the few per-row-block lane partials and apply the 1/batch scale.
    return jnp.sum(partials) / jnp.float32(n)


if __name__ == "__main__":
    key = jax.random.PRNGKey(0)
    k1, k2 = jax.random.split(key)
    # Small MSE-friendly shapes: batch=2, channels=4, spatial=16x16.
    y = jax.random.normal(k1, (2, 4, 16, 16), dtype=jnp.float32)
    y_pred = jax.random.normal(k2, (2, 4, 16, 16), dtype=jnp.float32)

    loss = mse(y, y_pred)
    jax.block_until_ready(loss)

    # Pure-JAX reference check (matches the module: divide by leading dim only).
    ref = jnp.sum((y - y_pred) ** 2) / y.shape[0]
    assert jnp.allclose(loss, ref, rtol=1e-5, atol=1e-5), (loss, ref)

    print("KERNEL_OK")
</pallas_src>

<mosaic_0001>
module attributes {stable_mosaic.version = 11 : i64} {
  func.func @_mse_kernel(%arg0: i32, %arg1: i32, %arg2: memref<8x1024xf32, #tpu.memory_space<vmem>>, %arg3: memref<8x1024xf32, #tpu.memory_space<vmem>>, %arg4: memref<1x1024xf32, #tpu.memory_space<vmem>>, %arg5: memref<8x1024xf32, #tpu.memory_space<vmem>>) attributes {dimension_semantics = [#tpu.dimension_semantics<parallel>, #tpu.dimension_semantics<arbitrary>], iteration_bounds = array<i64: 1, 1>, scalar_prefetch = 0 : i64, scratch_operands = 1 : i64, tpu.core_type = #tpu.core_type<tc>, window_params = [{transform_indices = @transform_0, window_bounds = array<i64: 8, 1024>}, {transform_indices = @transform_1, window_bounds = array<i64: 8, 1024>}, {transform_indices = @transform_2, window_bounds = array<i64: 1, 1024>}]} {
    %c0_i32 = arith.constant 0 : i32
    %0 = arith.cmpi eq, %arg1, %c0_i32 : i32
    %1 = arith.extui %0 : i1 to i32
    %c0_i32_0 = arith.constant 0 : i32
    %2 = arith.cmpi ne, %1, %c0_i32_0 : i32
    scf.if %2 {
      %cst_10 = arith.constant 0.000000e+00 : f32
      %21 = vector.broadcast %cst_10 : f32 to vector<8x1024xf32>
      %c0_11 = arith.constant 0 : index
      %c0_12 = arith.constant 0 : index
      %22 = vector.load %arg5[%c0_11, %c0_12] : memref<8x1024xf32, #tpu.memory_space<vmem>>, vector<8x1024xf32>
      tpu.vector_store %arg5[%c0_11, %c0_12], %21 {strides = array<i32>} : memref<8x1024xf32, #tpu.memory_space<vmem>>, vector<8x1024xf32>,
    } else {
    }
    %c0 = arith.constant 0 : index
    %c0_1 = arith.constant 0 : index
    %3 = vector.load %arg2[%c0, %c0_1] : memref<8x1024xf32, #tpu.memory_space<vmem>>, vector<8x1024xf32>
    %c0_2 = arith.constant 0 : index
    %c0_3 = arith.constant 0 : index
    %4 = vector.load %arg3[%c0_2, %c0_3] : memref<8x1024xf32, #tpu.memory_space<vmem>>, vector<8x1024xf32>
    %5 = arith.subf %3, %4 : vector<8x1024xf32>
    %6 = arith.mulf %5, %5 : vector<8x1024xf32>
    %c8_i32 = arith.constant 8 : i32
    %7 = arith.muli %arg0, %c8_i32 : i32
    %8 = tpu.iota {dimensions = array<i32: 0>} : vector<8x1024xi32>
    %9 = vector.broadcast %7 : i32 to vector<8x1024xi32>
    %10 = arith.addi %9, %8 : vector<8x1024xi32>
    %c2_i32 = arith.constant 2 : i32
    %11 = vector.broadcast %c2_i32 : i32 to vector<8x1024xi32>
    %12 = arith.cmpi slt, %10, %11 : vector<8x1024xi32>
    %cst = arith.constant 0.000000e+00 : f32
    %13 = vector.broadcast %cst : f32 to vector<8x1024xf32>
    %14 = arith.select %12, %6, %13 : vector<8x1024xi1>, vector<8x1024xf32>
    %c0_4 = arith.constant 0 : index
    %c0_5 = arith.constant 0 : index
    %15 = vector.load %arg5[%c0_4, %c0_5] : memref<8x1024xf32, #tpu.memory_space<vmem>>, vector<8x1024xf32>
    %16 = arith.addf %15, %14 : vector<8x1024xf32>
    %c0_6 = arith.constant 0 : index
    %c0_7 = arith.constant 0 : index
    %17 = vector.load %arg5[%c0_6, %c0_7] : memref<8x1024xf32, #tpu.memory_space<vmem>>, vector<8x1024xf32>
    tpu.vector_store %arg5[%c0_6, %c0_7], %16 {strides = array<i32>} : memref<8x1024xf32, #tpu.memory_space<vmem>>, vector<8x1024xf32>,
    %c0_i32_8 = arith.constant 0 : i32
    %18 = arith.cmpi eq, %arg1, %c0_i32_8 : i32
    %19 = arith.extui %18 : i1 to i32
    %c0_i32_9 = arith.constant 0 : i32
    %20 = arith.cmpi ne, %19, %c0_i32_9 : i32
    scf.if %20 {
      %c0_10 = arith.constant 0 : index
      %c0_11 = arith.constant 0 : index
      %21 = vector.load %arg5[%c0_10, %c0_11] : memref<8x1024xf32, #tpu.memory_space<vmem>>, vector<8x1024xf32>
      %cst_12 = arith.constant dense<0.000000e+00> : vector<1024xf32>
      %22 = vector.multi_reduction <add>, %21, %cst_12 [0] : vector<8x1024xf32> to vector<1024xf32>
      %23 = vector.shape_cast %22 : vector<1024xf32> to vector<1x1024xf32>
      %c0_13 = arith.constant 0 : index
      %c0_14 = arith.constant 0 : index
      %24 = vector.load %arg4[%c0_13, %c0_14] : memref<1x1024xf32, #tpu.memory_space<vmem>>, vector<1x1024xf32>
      tpu.vector_store %arg4[%c0_13, %c0_14], %23 {strides = array<i32>} : memref<1x1024xf32, #tpu.memory_space<vmem>>, vector<1x1024xf32>,
    } else {
    }
    return
  }
  func.func @transform_0(%arg0: i32, %arg1: i32) -> (i32, i32) {
    %c0_i32 = arith.constant 0 : i32
    return %arg0, %arg1 : i32, i32
  }
  func.func @transform_1(%arg0: i32, %arg1: i32) -> (i32, i32) {
    %c0_i32 = arith.constant 0 : i32
    return %arg0, %arg1 : i32, i32
  }
  func.func @transform_2(%arg0: i32, %arg1: i32) -> (i32, i32) {
    %c0_i32 = arith.constant 0 : i32
    %c0_i32_0 = arith.constant 0 : i32
    return %arg0, %c0_i32 : i32, i32
  }
}

</mosaic_0001>

<bundles_post_ra>
// kernel: tpu_custom_call.1
= control target key start
LH: loop header
LB: loop body
LE: loop exit
PB: predicated region body
PF: predicated region fallthrough
CT: control target
= control target key end

     0   :  { %7 = vsyncpa [#allocation4], 0  ;;  %s510_s0 = inlined_call_operand.hbm [shape: f32[2,1024], index: 0, kind: input, shape index: {}]   ;;  %s511_s1 = inlined_call_operand.hbm [shape: f32[2,1024], index: 1, kind: input, shape index: {}]   ;;  %s512_s2 = inlined_call_operand.hbm [shape: f32[1,1024], index: 2, kind: output, shape index: {}]  }
   0x1   :  { %8 = vsyncpa [#allocation7], 0 }
   0x2   :  { %9 = vsyncpa [#allocation5], 0 }
   0x3   :  { %14 = vsyncadd [#allocation4], 768  ;;  %s423_s9 = smov [#allocation3]   ;;  %s351_s13 = scalar_lea.hbm %s510_s0, 256 }
   0x4   :  { %s15_s10 = sshll.u32 %s423_s9, 4  ;;  %p352_p0 = scmp.ne.s32.totalorder %s510_s0, %s351_s13  ;;  %s16_s10 = int_to_ptr.vmem [resolvable:$true] %s15_s10 }
   0x5   :  { %p355_p1 = scmp.lt.u32.totalorder %s351_s13, %s510_s0 }
   0x7   :  { %p357_p2 = pnand %p355_p1, %p352_p0 }
   0x9   :  { %360 = shalt.err (!%p357_p2)
}
   0xa   :  { %s361_s18 = scalar_lea.vmem %s16_s10, 256  ;;  %s365_s19 = scalar_lea.vmem %s16_s10, 1024 }
   0xb   :  { %p362_p3 = scmp.ne.s32.totalorder %s16_s10, %s361_s18  ;;  %p366_p4 = scmp.lt.s32.totalorder %s16_s10, %s16_s10 }
   0xc   :  { %p367_p5 = scmp.lt.s32.totalorder %s365_s19, %s361_s18 }
   0xe   :  { %p368_p6 = por %p367_p5, %p366_p4 }
  0x10   :  { %p369_p7 = pnand %p368_p6, %p362_p3 }
  0x12   :  { %372 = shalt.err (!%p369_p7)
}
  0x13   :  { %s424_s20 = smov 256   ;;  %s425_s21 = smov 16  }
  0x14   :  { %21 = dma.hbm_to_vmem [thread:$0]  %s510_s0, 256, %s16_s10, [#allocation4], %s424_s20, %s424_s20, %s425_s21  }
  0x15   :  { %26 = vsyncadd [#allocation7], 768  ;;  %s426_s24 = smov [#allocation6]   ;;  %s373_s28 = scalar_lea.hbm %s511_s1, 256 }
  0x16   :  { %s27_s25 = sshll.u32 %s426_s24, 4  ;;  %p374_p8 = scmp.ne.s32.totalorder %s511_s1, %s373_s28  ;;  %s28_s25 = int_to_ptr.vmem [resolvable:$true] %s27_s25 }
  0x17   :  { %p377_p9 = scmp.lt.u32.totalorder %s373_s28, %s511_s1 }
  0x19   :  { %p379_p10 = pnand %p377_p9, %p374_p8 }
  0x1b   :  { %382 = shalt.err (!%p379_p10)
}
  0x1c   :  { %s383_s5 = scalar_lea.vmem %s28_s25, 256  ;;  %s387_s0 = scalar_lea.vmem %s28_s25, 1024 }
  0x1d   :  { %p384_p11 = scmp.ne.s32.totalorder %s28_s25, %s383_s5  ;;  %p388_p12 = scmp.lt.s32.totalorder %s28_s25, %s28_s25 }
  0x1e   :  { %p389_p13 = scmp.lt.s32.totalorder %s387_s0, %s383_s5 }
  0x20   :  { %p390_p0 = por %p389_p13, %p388_p12 }
  0x22   :  { %p391_p1 = pnand %p390_p0, %p384_p11 }
  0x24   :  { %394 = shalt.err (!%p391_p1)
}
  0x25   :  { %33 = dma.hbm_to_vmem [thread:$0]  %s511_s1, 256, %s28_s25, [#allocation7], %s424_s20, %s424_s20, %s425_s21  }
  0x26   :  { %417 = dma.done.wait [#allocation4], 1024  }
  0x27   :  { %418 = vsyncadd [#allocation4], 4294966272 }
  0x28   :  { %419 = dma.done.wait [#allocation7], 1024  }
  0x29   :  { %420 = vsyncadd [#allocation7], 4294966272  ;;  %v85_v0 = vlaneseq  ;;  %v427_v1 = vmov 1983009808   ;;  %v52_v3 = vld [vmem:[#allocation3] sm:$0xff]  ;;  %v53_v4 = vld [vmem:[#allocation3 + $0x8] sm:$0xff] }
  0x2a   :  { %v103_v2 = vunpack.c.l.s4 %v427_v1  ;;  %v54_v5 = vld [vmem:[#allocation3 + $0x10] sm:$0xff]  ;;  %v55_v8 = vld [vmem:[#allocation3 + $0x18] sm:$0xff]  ;;  %v56_v9 = vld [vmem:[#allocation3 + $0x20] sm:$0xff]  ;;  %v428_v18 = vmov 1966171168   ;;  %s429_s1 = smov [#allocation8]  }
  0x2b   :  { %v469_v6 = vshrl.u32 %v85_v0, 7  ;;  %v57_v10 = vld [vmem:[#allocation3 + $0x28] sm:$0xff]  ;;  %v58_v11 = vld [vmem:[#allocation3 + $0x30] sm:$0xff]  ;;  %v59_v12 = vld [vmem:[#allocation3 + $0x38] sm:$0xff]  ;;  %v282_v19 = vunpack.c.l.s4 %v428_v18  ;;  %s334_s8 = sshll.u32 %s429_s1, 4  ;;  %s335_s8 = int_to_ptr.vmem [resolvable:$true] %s334_s8 }
  0x2c   :  { %v104_v7 = vunpack.c.0.s8 %v103_v2  ;;  %v60_v13 = vld [vmem:[#allocation6] sm:$0xff]  ;;  %v61_v14 = vld [vmem:[#allocation6 + $0x8] sm:$0xff]  ;;  %v62_v15 = vld [vmem:[#allocation6 + $0x10] sm:$0xff]  ;;  %s395_s9 = scalar_lea.vmem %s335_s8, 128  ;;  %p400_p3 = scmp.lt.s32.totalorder %s335_s8, %s335_s8 }
  0x2d   :  { %v63_v16 = vld [vmem:[#allocation6 + $0x18] sm:$0xff]  ;;  %v68_v17 = vsub.f32 %v52_v3, %v60_v13  ;;  %v64_v20 = vld [vmem:[#allocation6 + $0x20] sm:$0xff]  ;;  %v65_v21 = vld [vmem:[#allocation6 + $0x28] sm:$0xff]  ;;  %v69_v23 = vsub.f32 %v53_v4, %v61_v14  ;;  %v70_v24 = vsub.f32 %v54_v5, %v62_v15  ;;  %v283_v39 = vunpack.c.0.s8 %v282_v19  ;;  %p396_p2 = scmp.ne.s32.totalorder %s335_s8, %s395_s9  ;;  %p401_p4 = scmp.lt.s32.totalorder %s395_s9, %s395_s9 }
  0x2e   :  { %v66_v22 = vld [vmem:[#allocation6 + $0x30] sm:$0xff]  ;;  %v71_v25 = vsub.f32 %v55_v8, %v63_v16  ;;  %v107_v26 = vsub.s32 %v104_v7, %v469_v6  ;;  %v67_v27 = vld [vmem:[#allocation6 + $0x38] sm:$0xff]  ;;  %v72_v28 = vsub.f32 %v56_v9, %v64_v20  ;;  %v73_v29 = vsub.f32 %v57_v10, %v65_v21 }
  0x2f   :  { %v74_v30 = vsub.f32 %v58_v11, %v66_v22  ;;  %v76_v31 = vmul.f32 %v68_v17, %v68_v17  ;;  %v75_v32 = vsub.f32 %v59_v12, %v67_v27  ;;  %v77_v33 = vmul.f32 %v69_v23, %v69_v23  ;;  %p402_p5 = por %p401_p4, %p400_p3 }
  0x30   :  { %v78_v34 = vmul.f32 %v70_v24, %v70_v24  ;;  %v79_v35 = vmul.f32 %v71_v25, %v71_v25  ;;  %v80_v36 = vmul.f32 %v72_v28, %v72_v28  ;;  %v81_v37 = vmul.f32 %v73_v29, %v73_v29 }
  0x31   :  { %v82_v38 = vmul.f32 %v74_v30, %v74_v30  ;;  %v83_v40 = vmul.f32 %v75_v32, %v75_v32  ;;  %vm89_vm0 = vcmp.lt.s32.totalorder %v469_v6, 2  ;;  %v474_v57 = vsub.s32 %v283_v39, %v469_v6  ;;  %p403_p6 = pnand %p402_p5, %p396_p2 }
  0x32   :  { %v98_v41 = vcombine.low %v76_v31, %v78_v34  ;;  %v99_v42 = vcombine.high %v76_v31, %v78_v34  ;;  %v134_v43 = vcombine.low %v77_v33, %v79_v35  ;;  %v135_v46 = vcombine.high %v77_v33, %v79_v35 }
  0x33   :  { %v100_v44 = vcombine.low %v80_v36, %v82_v38  ;;  %v101_v45 = vcombine.high %v80_v36, %v82_v38  ;;  %v136_v49 = vcombine.low %v81_v37, %v83_v40  ;;  %v137_v50 = vcombine.high %v81_v37, %v83_v40 }
  0x34   :  { %v108_v47 = vrot.slane %v98_v41, %v107_v26  ;;  %v115_v48 = vrot.slane %v99_v42, %v107_v26  ;;  %v144_v53 = vrot.slane %v134_v43, %v107_v26  ;;  %v151_v54 = vrot.slane %v135_v46, %v107_v26 }
  0x35   :  { %v122_v51 = vrot.slane %v100_v44, %v107_v26  ;;  %v129_v52 = vrot.slane %v101_v45, %v107_v26  ;;  %v158_v55 = vrot.slane %v136_v49, %v107_v26  ;;  %v165_v56 = vrot.slane %v137_v50, %v107_v26 }
  0x37   :  { %v130_v58 = vcombine.low %v108_v47, %v122_v51  ;;  %v131_v59 = vcombine.high %v108_v47, %v122_v51  ;;  %v132_v60 = vcombine.low %v115_v48, %v129_v52  ;;  %v133_v61 = vcombine.high %v115_v48, %v129_v52 }
  0x38   :  { %v166_v62 = vcombine.low %v144_v53, %v158_v55  ;;  %v167_v63 = vcombine.high %v144_v53, %v158_v55  ;;  %v168_v0 = vcombine.low %v151_v54, %v165_v56  ;;  %v169_v1 = vcombine.high %v151_v54, %v165_v56 }
  0x39   :  { %v178_v2 = vsel %vm89_vm0, %v130_v58, 0.0  ;;  %v179_v3 = vsel %vm89_vm0, %v131_v59, 0.0  ;;  %v180_v4 = vsel %vm89_vm0, %v132_v60, 0.0  ;;  %v181_v5 = vsel %vm89_vm0, %v133_v61, 0.0 }
  0x3a   :  { %v182_v7 = vsel %vm89_vm0, %v166_v62, 0.0  ;;  %v183_v8 = vsel %vm89_vm0, %v167_v63, 0.0  ;;  %v184_v9 = vsel %vm89_vm0, %v168_v0, 0.0  ;;  %v185_v10 = vsel %vm89_vm0, %v169_v1, 0.0 }
  0x3b   :  { %v221_v11 = vrot.slane %v178_v2, 4  ;;  %v227_v12 = vrot.slane %v179_v3, 4  ;;  %v233_v13 = vrot.slane %v180_v4, 4  ;;  %v239_v14 = vrot.slane %v181_v5, 4 }
  0x3c   :  { %v245_v15 = vrot.slane %v182_v7, 4  ;;  %v251_v16 = vrot.slane %v183_v8, 4  ;;  %v257_v17 = vrot.slane %v184_v9, 4  ;;  %v263_v18 = vrot.slane %v185_v10, 4 }
  0x3d   :  { %v222_v19 = vadd.f32 %v221_v11, %v178_v2  ;;  %v228_v20 = vadd.f32 %v227_v12, %v179_v3  ;;  %v234_v21 = vadd.f32 %v233_v13, %v180_v4  ;;  %v240_v22 = vadd.f32 %v239_v14, %v181_v5 }
  0x3e   :  { %v246_v23 = vadd.f32 %v245_v15, %v182_v7  ;;  %v252_v24 = vadd.f32 %v251_v16, %v183_v8  ;;  %v258_v25 = vadd.f32 %v257_v17, %v184_v9  ;;  %v264_v26 = vadd.f32 %v263_v18, %v185_v10 }
  0x3f   :  { %v223_v27 = vrot.slane %v222_v19, 2  ;;  %v229_v28 = vrot.slane %v228_v20, 2  ;;  %v235_v6 = vrot.slane %v234_v21, 2  ;;  %v241_v29 = vrot.slane %v240_v22, 2 }
  0x40   :  { %v247_v30 = vrot.slane %v246_v23, 2  ;;  %v253_v31 = vrot.slane %v252_v24, 2  ;;  %v259_v32 = vrot.slane %v258_v25, 2  ;;  %v265_v33 = vrot.slane %v264_v26, 2 }
  0x41   :  { %v224_v34 = vadd.f32 %v223_v27, %v222_v19  ;;  %v230_v35 = vadd.f32 %v229_v28, %v228_v20  ;;  %v236_v36 = vadd.f32 %v235_v6, %v234_v21  ;;  %v242_v37 = vadd.f32 %v241_v29, %v240_v22 }
  0x42   :  { %v248_v38 = vadd.f32 %v247_v30, %v246_v23  ;;  %v254_v39 = vadd.f32 %v253_v31, %v252_v24  ;;  %v260_v40 = vadd.f32 %v259_v32, %v258_v25  ;;  %v266_v41 = vadd.f32 %v265_v33, %v264_v26 }
  0x43   :  { %v225_v42 = vrot.slane %v224_v34, 1  ;;  %v231_v43 = vrot.slane %v230_v35, 1  ;;  %v237_v44 = vrot.slane %v236_v36, 1  ;;  %v243_v45 = vrot.slane %v242_v37, 1 }
  0x44   :  { %v249_v46 = vrot.slane %v248_v38, 1  ;;  %v255_v47 = vrot.slane %v254_v39, 1  ;;  %v261_v48 = vrot.slane %v260_v40, 1  ;;  %v267_v49 = vrot.slane %v266_v41, 1 }
  0x45   :  { %v226_v50 = vadd.f32 %v225_v42, %v224_v34  ;;  %v232_v51 = vadd.f32 %v231_v43, %v230_v35  ;;  %v238_v52 = vadd.f32 %v237_v44, %v236_v36  ;;  %v244_v53 = vadd.f32 %v243_v45, %v242_v37 }
  0x46   :  { %v250_v54 = vadd.f32 %v249_v46, %v248_v38  ;;  %v256_v55 = vadd.f32 %v255_v47, %v254_v39  ;;  %v262_v56 = vadd.f32 %v261_v48, %v260_v40  ;;  %v268_v58 = vadd.f32 %v267_v49, %v266_v41 }
  0x47   :  { %v277_v59 = vcombine.low %v226_v50, %v232_v51  ;;  %v278_v60 = vcombine.low %v238_v52, %v244_v53 }
  0x48   :  { %v279_v61 = vcombine.low %v250_v54, %v256_v55  ;;  %v280_v62 = vcombine.low %v262_v56, %v268_v58 }
  0x49   :  { %v287_v63 = vrot.slane %v277_v59, %v474_v57  ;;  %v294_v0 = vrot.slane %v278_v60, %v474_v57 }
  0x4a   :  { %v301_v1 = vrot.slane %v279_v61, %v474_v57  ;;  %v308_v2 = vrot.slane %v280_v62, %v474_v57 }
  0x4b   :  { %v309_v3 = vcombine.low %v287_v63, %v294_v0 }
  0x4c   :  { %v310_v4 = vcombine.low %v301_v1, %v308_v2 }
  0x4d   :  { %v317_v5 = vrot.slane %v309_v3, %v474_v57 }
  0x4e   :  { %v324_v7 = vrot.slane %v310_v4, %v474_v57 }
  0x50   :  { %v325_v8 = vcombine.low %v317_v5, %v324_v7 }
  0x52   :  { %327 = vst [vmem:[#allocation8] sm:$0xff] %v325_v8 }
  0x53   :  { %406 = shalt.err (!%p403_p6)
}
  0x54   :  { %s407_s12 = scalar_lea.hbm %s512_s2, 128 }
  0x55   :  { %p408_p7 = scmp.ne.s32.totalorder %s512_s2, %s407_s12  ;;  %p411_p8 = scmp.lt.u32.totalorder %s407_s12, %s512_s2 }
  0x57   :  { %p413_p9 = pnand %p411_p8, %p408_p7 }
  0x59   :  { %416 = shalt.err (!%p413_p9)
}
  0x5a   :  { %337 = dma.vmem_to_hbm [thread:$0]  %s335_s8, 128, %s512_s2, [#allocation5]  }
  0x5b   :  { %421 = dma.done.wait [#allocation5], 128  }
  0x5c   :  { %422 = vsyncadd [#allocation5], 4294967168 }
  0x5d   :  { %341 = vsyncpa [#allocation4], 1 }
  0x5e   :  { %342 = vsyncpa [#allocation7], 1 }
  0x5f   :  { %343 = vsyncpa [#allocation5], 1 }

</bundles_post_ra>
